<compile_context>
chip_gen: v7x
topology: tpu7x:2x2x1
jax: 0.10.0
libtpu: 0.0.40
codegen_flags: <defaults>
</compile_context>

<pallas_src>
import jax
import jax.numpy as jnp
from jax.experimental import pallas as pl
from jax.experimental.pallas import tpu as pltpu
import numpy as np

_LANE = 128
_K_CAP = 4096                    # max lanes per block (elements)
_MIN_KERNEL_BYTES = 4 * 1024 * 1024   # below this, the kernel is pure overhead


def _sublane_granule(dtype) -> int:
    """Packed sublane granule: f32 -> 8, bf16 -> 16, int8/fp8 -> 32."""
    return max(8, 32 // jnp.dtype(dtype).itemsize)


def _block_byte_cap() -> int:
    """Device-aware per-block byte budget (double-buffered in+out = 4x this)."""
    try:
        kind = jax.devices()[0].device_kind.lower()
    except Exception:  # pragma: no cover - defensive
        kind = ""
    if "v5 lite" in kind or "v5e" in kind:
        return 2 * 1024 * 1024   # v5e: bigger tiles give no roofline gain
    return 4 * 1024 * 1024       # v6e/v7x: amortize the ~0.35us step overhead


def _choose_slab(total: int, granule: int):
    """Pick (kt, rows) with rows * kt == total, kt % 128 == 0, preferring
    rows that fill the packed sublane granule.  Returns None if no legal
    lane-dense factorization exists (caller falls back to a pure reshape)."""
    best = None
    kt = (min(_K_CAP, total) // _LANE) * _LANE
    while kt >= _LANE:
        if total % kt == 0:
            rows = total // kt
            if rows >= granule and rows % granule == 0:
                return kt, rows          # ideal: full-vreg sublane occupancy
            if best is None:
                best = (kt, rows)        # divisible but thin rows (fallback)
        kt -= _LANE
    return best


def _choose_bt(rows: int, granule: int, b_cap: int):
    """Row tile: full axis if it fits the byte budget, else the largest
    granule-multiple divisor <= b_cap.  Returns None if no legal tiling."""
    if rows <= b_cap:
        return rows                      # full dim is always legal
    t = (b_cap // granule) * granule
    while t >= granule:
        if rows % t == 0:
            return t
        t -= granule
    return None


def _copy_kernel(x_ref, o_ref):
    # One contiguous lane-dense load + one contiguous lane-dense store per
    # grid step.  No compute: Unflatten is a pure view.
    o_ref[...] = x_ref[...]


def unflatten(x, channels: int, dim: int, *, force_kernel: bool = False):
    """x: (B, channels*dim*dim) -> (B, channels, dim, dim).

    Default path is a metadata-only reshape (the op is a pure view under
    XLA).  The Pallas identity-copy path is only taken for large inputs when
    `force_kernel=True` is not needed, or when explicitly forced (benchmark
    scaffold).  NOTE: the kernel path donates its (reshaped) input buffer via
    input_output_aliases.
    """
    B = x.shape[0]
    K = channels * dim * dim
    itemsize = jnp.dtype(x.dtype).itemsize
    total = B * K
    total_bytes = total * itemsize

    # Fast path: pure view, zero HBM traffic.
    if not force_kernel and total_bytes < _MIN_KERNEL_BYTES:
        return x.reshape(B, channels, dim, dim)

    granule = _sublane_granule(x.dtype)
    slab = _choose_slab(total, granule)
    if slab is None:
        # No legal lane-dense tiling (total not a multiple of 128): the view
        # is free anyway, so do not launch a kernel.
        return x.reshape(B, channels, dim, dim)
    kt, rows = slab

    byte_cap = _block_byte_cap()
    b_cap = max(granule, ((byte_cap // (kt * itemsize)) // granule) * granule)
    bt = _choose_bt(rows, granule, b_cap)
    if bt is None:
        return x.reshape(B, channels, dim, dim)

    # Ensure >= 2 grid steps along the parallel axis when legal, so v7x's two
    # TensorCores can split the copy (no-op on single-TC v5e/v6e).
    if (rows // bt == 1 and bt >= 2 * granule and bt % 2 == 0
            and (bt // 2) % granule == 0 and rows % (bt // 2) == 0):
        bt //= 2

    x_slab = x.reshape(rows, kt)  # metadata-only for contiguous row-major data

    out_slab = pl.pallas_call(
        _copy_kernel,
        out_shape=jax.ShapeDtypeStruct((rows, kt), x_slab.dtype),
        grid_spec=pltpu.PrefetchScalarGridSpec(
            num_scalar_prefetch=0,
            grid=(rows // bt,),
            in_specs=[pl.BlockSpec((bt, kt), lambda i: (i, 0))],
            out_specs=pl.BlockSpec((bt, kt), lambda i: (i, 0)),
        ),
        compiler_params=pltpu.CompilerParams(
            dimension_semantics=("parallel",),
            vmem_limit_bytes=32 * 1024 * 1024,
        ),
        # Reuse the input HBM buffer for the output: no new allocation, no
        # extra XLA copy for this identity op.
        input_output_aliases={0: 0},
        cost_estimate=pl.CostEstimate(
            flops=0, transcendentals=0, bytes_accessed=2 * total_bytes),
    )(x_slab)

    # Pure view back to (B, C, dim, dim); no transpose, no extra HBM traffic.
    return out_slab.reshape(B, channels, dim, dim)


if __name__ == "__main__":
    # Unflatten(dim=16, channels=4): (B, 4*16*16) -> (B, 4, 16, 16)
    channels, dim = 4, 16
    B = 2

    key = jax.random.PRNGKey(0)
    x = jax.random.normal(key, (B, channels * dim * dim), dtype=jnp.float32)

    # Snapshot reference BEFORE any kernel call (the kernel path donates its
    # input buffer via input_output_aliases).
    x_np = np.asarray(x)
    ref = x_np.reshape(B, channels, dim, dim)

    # 1) Default production path: metadata-only reshape, no kernel launched.
    out_view = jax.block_until_ready(unflatten(x, channels, dim))
    assert out_view.shape == (B, channels, dim, dim)
    np.testing.assert_array_equal(np.asarray(out_view), ref)

    # 2) Forced Pallas copy path (benchmark scaffold) on the same input.
    out_kernel = jax.block_until_ready(
        unflatten(x, channels, dim, force_kernel=True))
    assert out_kernel.shape == (B, channels, dim, dim)
    np.testing.assert_array_equal(np.asarray(out_kernel), ref)

    # 3) Forced Pallas path on a slightly larger shape that exercises a
    #    multi-step grid (rows split across >=2 "parallel" steps).
    B2, ch2, dim2 = 16, 8, 32
    x2 = jax.random.normal(jax.random.PRNGKey(0),
                           (B2, ch2 * dim2 * dim2), dtype=jnp.float32)
    ref2 = np.asarray(x2).reshape(B2, ch2, dim2, dim2)
    out2 = jax.block_until_ready(
        unflatten(x2, ch2, dim2, force_kernel=True))
    np.testing.assert_array_equal(np.asarray(out2), ref2)

    print("KERNEL_OK")
</pallas_src>

<mosaic_0001>
module attributes {stable_mosaic.version = 11 : i64} {
  func.func @_copy_kernel(%arg0: i32, %arg1: memref<8x256xf32, #tpu.memory_space<vmem>>, %arg2: memref<8x256xf32, #tpu.memory_space<vmem>>) attributes {dimension_semantics = [#tpu.dimension_semantics<parallel>], iteration_bounds = array<i64: 1>, scalar_prefetch = 0 : i64, scratch_operands = 0 : i64, tpu.core_type = #tpu.core_type<tc>, window_params = [{transform_indices = @transform_0, window_bounds = array<i64: 8, 256>}, {transform_indices = @transform_1, window_bounds = array<i64: 8, 256>}]} {
    %c0 = arith.constant 0 : index
    %c0_0 = arith.constant 0 : index
    %0 = vector.load %arg1[%c0, %c0_0] : memref<8x256xf32, #tpu.memory_space<vmem>>, vector<8x256xf32>
    %c0_1 = arith.constant 0 : index
    %c0_2 = arith.constant 0 : index
    %1 = vector.load %arg2[%c0_1, %c0_2] : memref<8x256xf32, #tpu.memory_space<vmem>>, vector<8x256xf32>
    tpu.vector_store %arg2[%c0_1, %c0_2], %0 {strides = array<i32>} : memref<8x256xf32, #tpu.memory_space<vmem>>, vector<8x256xf32>,
    return
  }
  func.func @transform_0(%arg0: i32) -> (i32, i32) {
    %c0_i32 = arith.constant 0 : i32
    %c0_i32_0 = arith.constant 0 : i32
    return %arg0, %c0_i32 : i32, i32
  }
  func.func @transform_1(%arg0: i32) -> (i32, i32) {
    %c0_i32 = arith.constant 0 : i32
    %c0_i32_0 = arith.constant 0 : i32
    return %arg0, %c0_i32 : i32, i32
  }
}

</mosaic_0001>

<bundles_post_ra>
// kernel: tpu_custom_call.1
= control target key start
LH: loop header
LB: loop body
LE: loop exit
PB: predicated region body
PF: predicated region fallthrough
CT: control target
= control target key end

     0   :  { %6 = vsyncpa [#allocation3], 0  ;;  %s126_s0 = inlined_call_operand.hbm [shape: f32[8,256], index: 0, kind: input, shape index: {}, may-alias: {0,1}]   ;;  %s127_s1 = inlined_call_operand.hbm [shape: f32[8,256], index: 1, kind: output, shape index: {}, may-alias: {0,1}]  }
   0x1   :  { %7 = vsyncpa [#allocation4], 0  ;;  %s90_s6 = smov [#allocation2]   ;;  %s42_s10 = scalar_lea.hbm %s126_s0, 256 }
   0x2   :  { %s14_s7 = sshll.u32 %s90_s6, 4  ;;  %p43_p0 = scmp.ne.s32.totalorder %s126_s0, %s42_s10  ;;  %s15_s7 = int_to_ptr.vmem [resolvable:$true] %s14_s7 }
   0x3   :  { %p46_p1 = scmp.lt.u32.totalorder %s42_s10, %s126_s0 }
   0x5   :  { %p48_p2 = pnand %p46_p1, %p43_p0 }
   0x7   :  { %51 = shalt.err (!%p48_p2)
}
   0x8   :  { %s52_s15 = scalar_lea.vmem %s15_s7, 256  ;;  %p57_p4 = scmp.lt.s32.totalorder %s15_s7, %s15_s7 }
   0x9   :  { %p53_p3 = scmp.ne.s32.totalorder %s15_s7, %s52_s15  ;;  %p58_p5 = scmp.lt.s32.totalorder %s52_s15, %s52_s15 }
   0xb   :  { %p59_p6 = por %p58_p5, %p57_p4 }
   0xd   :  { %p60_p7 = pnand %p59_p6, %p53_p3 }
   0xf   :  { %63 = shalt.err (!%p60_p7)
}
  0x10   :  { %17 = dma.hbm_to_vmem [thread:$0]  %s126_s0, 256, %s15_s7, [#allocation3]  }
  0x11   :  { %86 = dma.done.wait [#allocation3], 256  }
  0x12   :  { %87 = vsyncadd [#allocation3], 4294967040  ;;  %s91_s18 = smov [#allocation5]   ;;  %v21_v0 = vld [vmem:[#allocation2] sm:$0xff]  ;;  %v22_v1 = vld [vmem:[#allocation2 + $0x8] sm:$0xff] }
  0x13   :  { %s31_s19 = sshll.u32 %s91_s18, 4  ;;  %23 = vst [vmem:[#allocation5] sm:$0xff] %v21_v0  ;;  %24 = vst [vmem:[#allocation5 + $0x8] sm:$0xff] %v22_v1  ;;  %s32_s19 = int_to_ptr.vmem [resolvable:$true] %s31_s19 }
  0x14   :  { %s64_s20 = scalar_lea.vmem %s32_s19, 256  ;;  %p69_p9 = scmp.lt.s32.totalorder %s32_s19, %s32_s19 }
  0x15   :  { %p65_p8 = scmp.ne.s32.totalorder %s32_s19, %s64_s20  ;;  %p70_p10 = scmp.lt.s32.totalorder %s64_s20, %s64_s20 }
  0x17   :  { %p71_p11 = por %p70_p10, %p69_p9 }
  0x19   :  { %p72_p12 = pnand %p71_p11, %p65_p8 }
  0x1b   :  { %75 = shalt.err (!%p72_p12)
}
  0x1c   :  { %s76_s0 = scalar_lea.hbm %s127_s1, 256 }
  0x1d   :  { %p77_p13 = scmp.ne.s32.totalorder %s127_s1, %s76_s0  ;;  %p80_p0 = scmp.lt.u32.totalorder %s76_s0, %s127_s1 }
  0x1f   :  { %p82_p1 = pnand %p80_p0, %p77_p13 }
  0x21   :  { %85 = shalt.err (!%p82_p1)
}
  0x22   :  { %34 = dma.vmem_to_hbm [thread:$0]  %s32_s19, 256, %s127_s1, [#allocation4]  }
  0x23   :  { %88 = dma.done.wait [#allocation4], 256  }
  0x24   :  { %89 = vsyncadd [#allocation4], 4294967040 }
  0x25   :  { %38 = vsyncpa [#allocation3], 1 }
  0x26   :  { %39 = vsyncpa [#allocation4], 1 }

</bundles_post_ra>
